<compile_context>
chip_gen: v7x
topology: tpu7x:2x2x1
jax: 0.10.0
libtpu: 0.0.40
codegen_flags: <defaults>
</compile_context>

<pallas_src>
import functools
import math

import jax
import jax.numpy as jnp
from jax import lax
from jax.experimental import pallas as pl
from jax.experimental.pallas import tpu as pltpu


def _ln_rowwise_kernel(alpha_ref, bias_ref, x_ref, o_ref, *, eps, hidden):
    """segs == 1 path: the tile's last dim IS the full reduction dim."""
    alpha = alpha_ref[0]
    bias = bias_ref[0]
    x = x_ref[...].astype(jnp.float32)
    inv_h = jnp.float32(1.0 / hidden)
    # One pass over x: E[x] and E[x^2]; var = E[x^2] - mean^2 (saves one
    # full-tile read + one XLU reduction vs. the centered two-pass form).
    mean = jnp.sum(x, axis=-1, keepdims=True) * inv_h
    ex2 = jnp.sum(x * x, axis=-1, keepdims=True) * inv_h
    var = ex2 - mean * mean
    scale = lax.rsqrt(var + eps) * alpha          # fold alpha into inv-std
    o_ref[...] = ((x - mean) * scale + bias).astype(o_ref.dtype)


def _ln_packed_kernel(alpha_ref, bias_ref, x_ref, bdiag_ref, o_ref, *,
                      eps, hidden):
    """Packed path: each 128-lane-multiple row holds `lanes // hidden`
    independent logical rows of width `hidden`.

    Segmented mean/var via the MXU:  (x @ B)[r, j] = sum of x[r, :] over the
    `hidden`-lane segment that contains lane j, i.e. segmented sum AND
    broadcast-back in a single matmul (B is block-diagonal ones).
    """
    alpha = alpha_ref[0]
    bias = bias_ref[0]
    x = x_ref[...].astype(jnp.float32)
    b = bdiag_ref[...]
    inv_h = jnp.float32(1.0 / hidden)

    dot = functools.partial(jnp.dot,
                            precision=jax.lax.Precision.HIGHEST,
                            preferred_element_type=jnp.float32)
    mean = dot(x, b) * inv_h                      # per-segment mean, broadcast
    ex2 = dot(x * x, b) * inv_h                   # per-segment E[x^2]
    var = ex2 - mean * mean
    scale = lax.rsqrt(var + eps) * alpha
    o_ref[...] = ((x - mean) * scale + bias).astype(o_ref.dtype)


def _pick_block_rows(rows_p, lanes, itemsize, vmem_budget_bytes):
    """Row-tile size: multiple of 8, <= 512, targeting >= ~8 grid steps so the
    pipeline overlaps HBM traffic with compute and v7x's two TensorCores both
    get work.  Accounts for f32 intermediates (matters for bf16 inputs)."""
    # in+out double-buffered io-dtype tiles + ~6 live f32 intermediates.
    per_row_bytes = lanes * (4 * itemsize + 6 * 4)
    vmem_rows = max(8, (vmem_budget_bytes // per_row_bytes) // 8 * 8)
    # NOTE: for extremely large `lanes` the 8-row minimum can exceed the
    # budget; the default scoped VMEM still covers any realistic hidden size.
    if rows_p <= 16:
        return rows_p                              # tiny: full-extent block
    by_steps = -(-rows_p // 8)                     # cdiv -> ~8 grid steps
    by_steps = max(8, -(-by_steps // 8) * 8)       # round up to multiple of 8
    return int(min(512, vmem_rows, by_steps))


def layer_normalization(x, alpha, bias, *, eps=1e-6,
                        vmem_budget_bytes=8 * 1024 * 1024):
    """LayerNormalization.forward: normalize over the last axis with scalar
    learnable scale (alpha) and shift (bias); unbiased=False variance."""
    orig_shape = x.shape
    H = orig_shape[-1]
    x2 = x.reshape(-1, H)
    R = x2.shape[0]

    # Lane-dense packing: fold `segs` consecutive logical rows into one row so
    # the kernel's last dim is a multiple of 128 lanes (unmasked full-width
    # vst).  Generalized to any H whose lcm with 128 stays small; otherwise
    # fall back to segs=1 (rare odd widths).
    segs = 1
    if H < 128:
        lanes_packed = math.lcm(H, 128)
        if lanes_packed <= 512:
            segs = lanes_packed // H

    pad_rows = 0
    if segs > 1:
        pad_to = segs * 8                          # keep rows_p a multiple of 8
        pad_rows = (-R) % pad_to
        if pad_rows:
            x2 = jnp.pad(x2, ((0, pad_rows), (0, 0)))
    Rp = R + pad_rows
    xp = x2.reshape(Rp // segs, segs * H)
    rows_p, lanes = xp.shape

    itemsize = jnp.dtype(x.dtype).itemsize
    smem = pltpu.MemorySpace.SMEM
    compiler_params = pltpu.CompilerParams(
        dimension_semantics=("parallel",),
        # 32 MiB is within every generation's physical VMEM (v7x: 64 MiB/TC).
        vmem_limit_bytes=32 * 1024 * 1024,
    )

    if segs == 1:
        block_rows = _pick_block_rows(rows_p, lanes, itemsize,
                                      vmem_budget_bytes)
        grid = (pl.cdiv(rows_p, block_rows),)
        out = pl.pallas_call(
            functools.partial(_ln_rowwise_kernel, eps=eps, hidden=H),
            out_shape=jax.ShapeDtypeStruct((rows_p, lanes), x.dtype),
            grid=grid,
            in_specs=[
                pl.BlockSpec(memory_space=smem),                 # alpha (1,)
                pl.BlockSpec(memory_space=smem),                 # bias  (1,)
                pl.BlockSpec((block_rows, lanes), lambda i: (i, 0)),
            ],
            out_specs=pl.BlockSpec((block_rows, lanes), lambda i: (i, 0)),
            compiler_params=compiler_params,
        )(alpha, bias, xp)
    else:
        # Static block-diagonal ones matrix for the segmented sum+broadcast.
        li = jnp.arange(lanes, dtype=jnp.int32)
        bdiag = ((li[:, None] // H) == (li[None, :] // H)).astype(jnp.float32)
        budget = max(1 << 20, vmem_budget_bytes - 2 * lanes * lanes * 4)
        block_rows = _pick_block_rows(rows_p, lanes, itemsize, budget)
        grid = (pl.cdiv(rows_p, block_rows),)
        out = pl.pallas_call(
            functools.partial(_ln_packed_kernel, eps=eps, hidden=H),
            out_shape=jax.ShapeDtypeStruct((rows_p, lanes), x.dtype),
            grid=grid,
            in_specs=[
                pl.BlockSpec(memory_space=smem),                 # alpha (1,)
                pl.BlockSpec(memory_space=smem),                 # bias  (1,)
                pl.BlockSpec((block_rows, lanes), lambda i: (i, 0)),
                pl.BlockSpec((lanes, lanes), lambda i: (0, 0)),  # B, resident
            ],
            out_specs=pl.BlockSpec((block_rows, lanes), lambda i: (i, 0)),
            compiler_params=compiler_params,
        )(alpha, bias, xp, bdiag)

    out = out.reshape(Rp, H)
    if pad_rows:
        out = out[:R]
    return out.reshape(orig_shape)


def encoder_forward(x, mask, alpha, bias, *, eps=1e-6):
    # TODO(synk): Encoder.layers is an arbitrary nn.ModuleList supplied at
    # construction; only the final LayerNormalization has a Pallas kernel here.
    del mask
    return layer_normalization(x, alpha, bias, eps=eps)


def _ref_layernorm(x, alpha, bias, eps=1e-6):
    mean = jnp.mean(x, axis=-1, keepdims=True)
    var = jnp.mean((x - mean) ** 2, axis=-1, keepdims=True)
    return alpha[0] * (x - mean) / jnp.sqrt(var + eps) + bias[0]


if __name__ == "__main__":
    key = jax.random.PRNGKey(0)
    B, S, H = 2, 8, 32
    x = jax.random.normal(key, (B, S, H), dtype=jnp.float32)
    mask = jnp.ones((B, 1, S, S), dtype=jnp.float32)

    # nn.Parameter(torch.ones(1)) / nn.Parameter(torch.zeros(1))
    alpha = jnp.ones((1,), dtype=jnp.float32)
    bias = jnp.zeros((1,), dtype=jnp.float32)

    # Packed (lane-dense, H=32 -> segs=4, row padding) path.
    out = jax.block_until_ready(encoder_forward(x, mask, alpha, bias, eps=1e-6))
    ref = _ref_layernorm(x, alpha, bias)
    assert jnp.allclose(out, ref, atol=1e-5, rtol=1e-5), "packed path mismatch"

    # Non-packed path (H == 128 -> segs=1).
    x2 = jax.random.normal(jax.random.PRNGKey(1), (B, S, 128), dtype=jnp.float32)
    out2 = jax.block_until_ready(layer_normalization(x2, alpha, bias, eps=1e-6))
    ref2 = _ref_layernorm(x2, alpha, bias)
    assert jnp.allclose(out2, ref2, atol=1e-5, rtol=1e-5), "dense path mismatch"

    # Multi-step grid, packed H=64 -> segs=2 path (exercises tiling/pipeline).
    x3 = jax.random.normal(jax.random.PRNGKey(2), (4, 128, 64), dtype=jnp.float32)
    out3 = jax.block_until_ready(layer_normalization(x3, alpha, bias, eps=1e-6))
    ref3 = _ref_layernorm(x3, alpha, bias)
    assert jnp.allclose(out3, ref3, atol=1e-5, rtol=1e-5), "tiled path mismatch"

    print("KERNEL_OK")
</pallas_src>

<mosaic_0001>
module attributes {stable_mosaic.version = 11 : i64} {
  func.func @_ln_packed_kernel(%arg0: i32, %arg1: memref<1xf32, #tpu.memory_space<smem>>, %arg2: memref<1xf32, #tpu.memory_space<smem>>, %arg3: memref<8x128xf32, #tpu.memory_space<vmem>>, %arg4: memref<128x128xf32, #tpu.memory_space<vmem>>, %arg5: memref<8x128xf32, #tpu.memory_space<vmem>>) attributes {dimension_semantics = [#tpu.dimension_semantics<parallel>], iteration_bounds = array<i64: 1>, scalar_prefetch = 0 : i64, scratch_operands = 0 : i64, tpu.core_type = #tpu.core_type<tc>, window_params = [{transform_indices = @transform_0, window_bounds = array<i64: 1>}, {transform_indices = @transform_1, window_bounds = array<i64: 1>}, {transform_indices = @transform_2, window_bounds = array<i64: 8, 128>}, {pipeline_mode = #tpu.pipeline_mode<synchronous>, transform_indices = @transform_3, window_bounds = array<i64: 128, 128>}, {transform_indices = @transform_4, window_bounds = array<i64: 8, 128>}]} {
    %c0 = arith.constant 0 : index
    %0 = memref.load %arg1[%c0] : memref<1xf32, #tpu.memory_space<smem>>
    %c0_0 = arith.constant 0 : index
    %1 = memref.load %arg2[%c0_0] : memref<1xf32, #tpu.memory_space<smem>>
    %c0_1 = arith.constant 0 : index
    %c0_2 = arith.constant 0 : index
    %2 = vector.load %arg3[%c0_1, %c0_2] : memref<8x128xf32, #tpu.memory_space<vmem>>, vector<8x128xf32>
    %c0_3 = arith.constant 0 : index
    %c0_4 = arith.constant 0 : index
    %3 = vector.load %arg4[%c0_3, %c0_4] : memref<128x128xf32, #tpu.memory_space<vmem>>, vector<128x128xf32>
    %cst = arith.constant dense<0.000000e+00> : vector<8x128xf32>
    %4 = tpu.matmul %2, %3, %cst {dimension_numbers = #tpu.dot_dimension_numbers<[1], [0], [0], [1], [0, 0, 1, 1], [], []>, precision = #tpu.contract_precision<fp32>} : vector<8x128xf32>, vector<128x128xf32>, vector<8x128xf32> -> vector<8x128xf32>
    %cst_5 = arith.constant 3.125000e-02 : f32
    %5 = vector.broadcast %cst_5 : f32 to vector<8x128xf32>
    %6 = arith.mulf %4, %5 : vector<8x128xf32>
    %7 = arith.mulf %2, %2 : vector<8x128xf32>
    %cst_6 = arith.constant dense<0.000000e+00> : vector<8x128xf32>
    %8 = tpu.matmul %7, %3, %cst_6 {dimension_numbers = #tpu.dot_dimension_numbers<[1], [0], [0], [1], [0, 0, 1, 1], [], []>, precision = #tpu.contract_precision<fp32>} : vector<8x128xf32>, vector<128x128xf32>, vector<8x128xf32> -> vector<8x128xf32>
    %cst_7 = arith.constant 3.125000e-02 : f32
    %9 = vector.broadcast %cst_7 : f32 to vector<8x128xf32>
    %10 = arith.mulf %8, %9 : vector<8x128xf32>
    %11 = arith.mulf %6, %6 : vector<8x128xf32>
    %12 = arith.subf %10, %11 : vector<8x128xf32>
    %cst_8 = arith.constant 9.99999997E-7 : f32
    %13 = vector.broadcast %cst_8 : f32 to vector<8x128xf32>
    %14 = arith.addf %12, %13 : vector<8x128xf32>
    %15 = math.rsqrt %14 : vector<8x128xf32>
    %16 = vector.broadcast %0 : f32 to vector<8x128xf32>
    %17 = arith.mulf %15, %16 : vector<8x128xf32>
    %18 = arith.subf %2, %6 : vector<8x128xf32>
    %19 = arith.mulf %18, %17 : vector<8x128xf32>
    %20 = vector.broadcast %1 : f32 to vector<8x128xf32>
    %21 = arith.addf %19, %20 : vector<8x128xf32>
    %c0_9 = arith.constant 0 : index
    %c0_10 = arith.constant 0 : index
    %22 = vector.load %arg5[%c0_9, %c0_10] : memref<8x128xf32, #tpu.memory_space<vmem>>, vector<8x128xf32>
    tpu.vector_store %arg5[%c0_9, %c0_10], %21 {strides = array<i32>} : memref<8x128xf32, #tpu.memory_space<vmem>>, vector<8x128xf32>,
    return
  }
  func.func @transform_0(%arg0: i32) -> i32 {
    %c0_i32 = arith.constant 0 : i32
    %c0_i32_0 = arith.constant 0 : i32
    return %c0_i32 : i32
  }
  func.func @transform_1(%arg0: i32) -> i32 {
    %c0_i32 = arith.constant 0 : i32
    %c0_i32_0 = arith.constant 0 : i32
    return %c0_i32 : i32
  }
  func.func @transform_2(%arg0: i32) -> (i32, i32) {
    %c0_i32 = arith.constant 0 : i32
    %c0_i32_0 = arith.constant 0 : i32
    return %arg0, %c0_i32 : i32, i32
  }
  func.func @transform_3(%arg0: i32) -> (i32, i32) {
    %c0_i32 = arith.constant 0 : i32
    %c0_i32_0 = arith.constant 0 : i32
    %c0_i32_1 = arith.constant 0 : i32
    return %c0_i32, %c0_i32_0 : i32, i32
  }
  func.func @transform_4(%arg0: i32) -> (i32, i32) {
    %c0_i32 = arith.constant 0 : i32
    %c0_i32_0 = arith.constant 0 : i32
    return %arg0, %c0_i32 : i32, i32
  }
}

</mosaic_0001>

<bundles_post_ra>
// kernel: tpu_custom_call.1
= control target key start
LH: loop header
LB: loop body
LE: loop exit
PB: predicated region body
PF: predicated region fallthrough
CT: control target
= control target key end

     0   :  { %11 = vsyncpa [#allocation5], 0  ;;  %s2833_s0 = inlined_call_operand.<no memory space> [shape: f32[1], index: 0, kind: input, shape index: {}]   ;;  %s2834_s1 = inlined_call_operand.<no memory space> [shape: f32[1], index: 1, kind: input, shape index: {}]   ;;  %s2835_s2 = inlined_call_operand.hbm [shape: f32[8,128], index: 2, kind: input, shape index: {}]   ;;  %s2836_s3 = inlined_call_operand.hbm [shape: f32[128,128], index: 3, kind: input, shape index: {}]   ;;  %s2837_s4 = inlined_call_operand.hbm [shape: f32[8,128], index: 4, kind: output, shape index: {}]  }
   0x1   :  { %12 = vsyncpa [#allocation8], 0 }
   0x2   :  { %13 = vsyncpa [#allocation6], 0  ;;  %s2391_s15 = smov [#allocation4]   ;;  %s2392_s17 = smov [#allocation7]  }
   0x3   :  { %s24_s16 = sshll.u32 %s2391_s15, 4  ;;  %s33_s18 = sshll.u32 %s2392_s17, 4  ;;  %s25_s16 = int_to_ptr.vmem [resolvable:$true] %s24_s16  ;;  %s2424_s18 = int_to_ptr.vmem [resolvable:$true] %s33_s18 }
   0x4   :  { %s2319_s21 = scalar_lea.hbm %s2835_s2, 128 }
   0x5   :  { %p2320_p0 = scmp.ne.s32.totalorder %s2835_s2, %s2319_s21  ;;  %p2323_p1 = scmp.lt.u32.totalorder %s2319_s21, %s2835_s2 }
   0x7   :  { %p2325_p2 = pnand %p2323_p1, %p2320_p0 }
   0x9   :  { %2328 = shalt.err (!%p2325_p2)
}
   0xa   :  { %s2329_s26 = scalar_lea.vmem %s25_s16, 128  ;;  %p2334_p4 = scmp.lt.s32.totalorder %s25_s16, %s25_s16 }
   0xb   :  { %p2330_p3 = scmp.ne.s32.totalorder %s25_s16, %s2329_s26  ;;  %p2335_p5 = scmp.lt.s32.totalorder %s2329_s26, %s2329_s26 }
   0xd   :  { %p2336_p6 = por %p2335_p5, %p2334_p4 }
   0xf   :  { %p2337_p7 = pnand %p2336_p6, %p2330_p3 }
  0x11   :  { %2340 = shalt.err (!%p2337_p7)
}
  0x12   :  { %27 = dma.hbm_to_vmem [thread:$0]  %s2835_s2, 128, %s25_s16, [#allocation5]  }
  0x13   :  { %s2341_s5 = scalar_lea.hbm %s2836_s3, 2048 }
  0x14   :  { %p2342_p8 = scmp.ne.s32.totalorder %s2836_s3, %s2341_s5  ;;  %p2345_p9 = scmp.lt.u32.totalorder %s2341_s5, %s2836_s3 }
  0x16   :  { %p2347_p10 = pnand %p2345_p9, %p2342_p8 }
  0x18   :  { %2350 = shalt.err (!%p2347_p10)
}
  0x19   :  { %s2351_s10 = scalar_lea.vmem %s2424_s18, 2048  ;;  %p2356_p12 = scmp.lt.s32.totalorder %s2424_s18, %s2424_s18 }
  0x1a   :  { %p2352_p11 = scmp.ne.s32.totalorder %s2424_s18, %s2351_s10  ;;  %p2357_p13 = scmp.lt.s32.totalorder %s2351_s10, %s2351_s10 }
  0x1c   :  { %p2358_p0 = por %p2357_p13, %p2356_p12 }
  0x1e   :  { %p2359_p1 = pnand %p2358_p0, %p2352_p11 }
  0x20   :  { %2362 = shalt.err (!%p2359_p1)
}
  0x21   :  { %s2393_s2 = smov 128   ;;  %s2394_s11 = smov 8  }
  0x22   :  { %39 = dma.hbm_to_vmem [thread:$0]  %s2836_s3, 2048, %s2424_s18, [#allocation8], %s2393_s2, %s2393_s2, %s2394_s11  }
  0x23   :  { %2385 = dma.done.wait [#allocation5], 128  }
  0x24   :  { %2386 = vsyncadd [#allocation5], 4294967168 }
  0x25   :  { %2387 = dma.done.wait [#allocation8], 2048  }
  0x26   :  { %2388 = vsyncadd [#allocation8], 4294965248  ;;  %v2395_v0 = vmov 0.0|0.0   ;;  %vm2396_vm0 = vmmov 0   ;;  %v2397_v1 = vmov 0.0   ;;  %v49_v2 = vld [vmem:[#allocation7] sm:$0xff] }
  0x27   :  { %2001 = vmatprep.subr.bf16.mxu0 %v2395_v0  ;;  %2145 = vmatprep.subr.bf16.mxu1 %v2395_v0  ;;  %v50_v3 = vld [vmem:[#allocation7 + $0x8] sm:$0xff]  ;;  %v51_v4 = vld [vmem:[#allocation7 + $0x10] sm:$0xff]  ;;  %v66_v5 = vand.u32 4294901760, %v49_v2  ;;  %v52_v7 = vld [vmem:[#allocation7 + $0x18] sm:$0xff]  ;;  %s2398_s17 = smov [#allocation9]  }
  0x28   :  { %1613 = vmatprep.mubr.msk.f32.mxu0 %vm2396_vm0, %v2397_v1  ;;  %1823 = vmatprep.mubr.msk.f32.mxu1 %vm2396_vm0, %v2397_v1  ;;  %v69_v6 = vand.u32 4294901760, %v50_v3  ;;  %v72_v8 = vand.u32 4294901760, %v51_v4  ;;  %v75_v9 = vand.u32 4294901760, %v52_v7  ;;  %v2461_v10 = vld [vmem:[#allocation7 + $0x20] sm:$0xff]  ;;  %v2463_v11 = vld [vmem:[#allocation7 + $0x28] sm:$0xff]  ;;  %v2475_v16 = vld [vmem:[#allocation7 + $0x30] sm:$0xff] }
  0x29   :  { %v78_v14 = vand.u32 4294901760, %v2461_v10  ;;  %v81_v15 = vand.u32 4294901760, %v2463_v11  ;;  %v2477_v17 = vld [vmem:[#allocation7 + $0x38] sm:$0xff]  ;;  %v84_v20 = vand.u32 4294901760, %v2475_v16  ;;  %v57_v22 = vld [vmem:[#allocation7 + $0x40] sm:$0xff]  ;;  %v58_v23 = vld [vmem:[#allocation7 + $0x48] sm:$0xff]  ;;  %v2498_v35 = vsub.f32 %v49_v2, %v66_v5 }
  0x2a   :  { %v2465_v12 = vpack.c.bf16 %v69_v6, %v66_v5  ;;  %v2469_v13 = vpack.c.bf16 %v75_v9, %v72_v8  ;;  %v2479_v18 = vld [vmem:[#allocation4] sm:$0xff]  ;;  %v87_v21 = vand.u32 4294901760, %v2477_v17  ;;  %v59_v26 = vld [vmem:[#allocation7 + $0x50] sm:$0xff]  ;;  %v61_v28 = vld [vmem:[#allocation7 + $0x60] sm:$0xff]  ;;  %v90_v30 = vand.u32 4294901760, %v57_v22  ;;  %s1367_s18 = sshll.u32 %s2398_s17, 4  ;;  %s1368_s18 = int_to_ptr.vmem [resolvable:$true] %s1367_s18 }
  0x2b   :  { %v2483_v19 = vpack.c.bf16 %v81_v15, %v78_v14  ;;  %v2490_v24 = vand.u32 4294901760, %v2479_v18  ;;  %v707_v25 = vmul.f32 %v2479_v18, %v2479_v18  ;;  %v60_v27 = vld [vmem:[#allocation7 + $0x58] sm:$0xff]  ;;  %v93_v31 = vand.u32 4294901760, %v58_v23  ;;  %v62_v32 = vld [vmem:[#allocation7 + $0x68] sm:$0xff]  ;;  %v63_v33 = vld [vmem:[#allocation7 + $0x70] sm:$0xff]  ;;  %s2363_s19 = scalar_lea.vmem %s1368_s18, 128  ;;  %p2368_p3 = scmp.lt.s32.totalorder %s1368_s18, %s1368_s18 }
  0x2c   :  { %2003 = vmatpush3.bf16.msra.mxu0 %v2465_v12  ;;  %2147 = vmatpush3.bf16.msra.mxu1 %v2465_v12  ;;  %v2496_v29 = vpack.c.bf16 %v87_v21, %v84_v20  ;;  %v64_v34 = vld [vmem:[#allocation7 + $0x78] sm:$0xff]  ;;  %v2506_v37 = vsub.f32 %v50_v3, %v69_v6  ;;  %v2508_v38 = vsub.f32 %v51_v4, %v72_v8  ;;  %v96_v39 = vand.u32 4294901760, %v59_v26  ;;  %p2364_p2 = scmp.ne.s32.totalorder %s1368_s18, %s2363_s19  ;;  %p2369_p4 = scmp.lt.s32.totalorder %s2363_s19, %s2363_s19 }
  0x2d   :  { %2004 = vmatprep.subr.bf16.mxu0 %v2395_v0  ;;  %2148 = vmatprep.subr.bf16.mxu1 %v2395_v0  ;;  %v2504_v36 = vsub.f32 %v2479_v18, %v2490_v24  ;;  %v99_v40 = vand.u32 4294901760, %v60_v27  ;;  %v2510_v41 = vand.u32 4294901760, %v707_v25  ;;  %v102_v42 = vand.u32 4294901760, %v61_v28 }
  0x2e   :  { %v105_v43 = vand.u32 4294901760, %v62_v32  ;;  %v108_v44 = vand.u32 4294901760, %v63_v33  ;;  %v111_v45 = vand.u32 4294901760, %v64_v34  ;;  %v2514_v46 = vpack.c.bf16 %v93_v31, %v90_v30  ;;  %p2370_p5 = por %p2369_p4, %p2368_p3 }
  0x2f   :  { %v159_v47 = vand.u32 4294901760, %v2498_v35  ;;  %v2839_v48 = vand.u32 4294901760, %v2504_v36  ;;  %v166_v49 = vand.u32 4294901760, %v2506_v37  ;;  %v173_v50 = vand.u32 4294901760, %v2508_v38 }
  0x30   :  { %2006 = vmatpush3.bf16.msra.mxu0 %v2469_v13  ;;  %2150 = vmatpush3.bf16.msra.mxu1 %v2469_v13  ;;  %v2522_v51 = vsub.f32 %v52_v7, %v75_v9  ;;  %v2525_v52 = vsub.f32 %v707_v25, %v2510_v41  ;;  %v2527_v53 = vpack.c.bf16 %v99_v40, %v96_v39  ;;  %p2371_p6 = pnand %p2370_p5, %p2364_p2 }
  0x31   :  { %2007 = vmatprep.subr.bf16.mxu0 %v2395_v0  ;;  %2151 = vmatprep.subr.bf16.mxu1 %v2395_v0  ;;  %v2529_v54 = vpack.c.bf16 %v105_v43, %v102_v42  ;;  %v2531_v55 = vpack.c.bf16 %v111_v45, %v108_v44  ;;  %v160_v56 = vsub.f32 %v2498_v35, %v159_v47 }
  0x32   :  { %v2537_v57 = vsub.f32 %v2461_v10, %v78_v14  ;;  %v2540_v58 = vsub.f32 %v2463_v11, %v81_v15  ;;  %v149_v59 = vsub.f32 %v2504_v36, %v2839_v48  ;;  %v167_v60 = vsub.f32 %v2506_v37, %v166_v49 }
  0x33   :  { %v2549_v61 = vsub.f32 %v2508_v38, %v173_v50  ;;  %v180_v62 = vand.u32 4294901760, %v2522_v51  ;;  %v2838_v63 = vand.u32 4294901760, %v2525_v52  ;;  %v2554_v2 = vsub.f32 %v2475_v16, %v84_v20 }
  0x34   :  { %2009 = vmatpush3.bf16.msra.mxu0 %v2483_v19  ;;  %2153 = vmatpush3.bf16.msra.mxu1 %v2483_v19  ;;  %v2557_v3 = vsub.f32 %v2477_v17, %v87_v21  ;;  %v2559_v4 = vsub.f32 %v57_v22, %v90_v30  ;;  %v2561_v5 = vsub.f32 %v58_v23, %v93_v31  ;;  %v187_v9 = vand.u32 4294901760, %v2537_v57 }
  0x35   :  { %2010 = vmatprep.subr.bf16.mxu0 %v2395_v0  ;;  %2154 = vmatprep.subr.bf16.mxu1 %v2395_v0  ;;  %v2563_v6 = vsub.f32 %v59_v26, %v96_v39  ;;  %v2565_v7 = vsub.f32 %v60_v27, %v99_v40  ;;  %v2567_v8 = vsub.f32 %v61_v28, %v102_v42  ;;  %v161_v15 = vand.u32 4294901760, %v160_v56 }
  0x36   :  { %v2572_v10 = vsub.f32 %v62_v32, %v105_v43  ;;  %v2574_v11 = vsub.f32 %v63_v33, %v108_v44  ;;  %v2576_v14 = vsub.f32 %v64_v34, %v111_v45  ;;  %v168_v16 = vand.u32 4294901760, %v167_v60 }
  0x37   :  { %v181_v17 = vsub.f32 %v2522_v51, %v180_v62  ;;  %v194_v20 = vand.u32 4294901760, %v2540_v58  ;;  %v792_v21 = vsub.f32 %v2525_v52, %v2838_v63  ;;  %v201_v22 = vand.u32 4294901760, %v2554_v2 }
  0x38   :  { %2012 = vmatpush3.bf16.msra.mxu0 %v2496_v29  ;;  %2156 = vmatpush3.bf16.msra.mxu1 %v2496_v29  ;;  %v208_v23 = vand.u32 4294901760, %v2557_v3  ;;  %v215_v25 = vand.u32 4294901760, %v2559_v4  ;;  %v222_v26 = vand.u32 4294901760, %v2561_v5  ;;  %v229_v27 = vand.u32 4294901760, %v2563_v6 }
  0x39   :  { %2013 = vmatprep.subr.bf16.mxu0 %v2395_v0  ;;  %2157 = vmatprep.subr.bf16.mxu1 %v2395_v0  ;;  %v236_v28 = vand.u32 4294901760, %v2565_v7  ;;  %v243_v30 = vand.u32 4294901760, %v2567_v8  ;;  %v250_v31 = vand.u32 4294901760, %v2572_v10  ;;  %v257_v32 = vand.u32 4294901760, %v2574_v11 }
  0x3a   :  { %v2840_v33 = vand.u32 4294901760, %v2576_v14  ;;  %v2597_v34 = vpack.c.bf16 %v166_v49, %v159_v47  ;;  %v2601_v39 = vpack.c.bf16 %v180_v62, %v173_v50  ;;  %v2603_v40 = vpack.c.bf16 %v194_v20, %v187_v9 }
  0x3b   :  { %v2605_v42 = vpack.c.bf16 %v208_v23, %v201_v22  ;;  %v2607_v43 = vpack.c.bf16 %v222_v26, %v215_v25  ;;  %v2609_v44 = vpack.c.bf16 %v236_v28, %v229_v27  ;;  %v2611_v45 = vpack.c.bf16 %v250_v31, %v243_v30 }
  0x3c   :  { %2015 = vmatpush3.bf16.msra.mxu0 %v2514_v46  ;;  %2159 = vmatpush3.bf16.msra.mxu1 %v2514_v46  ;;  %v2617_v47 = vpack.c.bf16 %v2840_v33, %v257_v32  ;;  %v150_v49 = vand.u32 4294901760, %v149_v59  ;;  %v793_v56 = vand.u32 4294901760, %v792_v21  ;;  %v188_v50 = vsub.f32 %v2537_v57, %v187_v9 }
  0x3d   :  { %2016 = vmatprep.subr.bf16.mxu0 %v2395_v0  ;;  %2160 = vmatprep.subr.bf16.mxu1 %v2395_v0  ;;  %v195_v60 = vsub.f32 %v2540_v58, %v194_v20  ;;  %v2026_v62 = vpack.c.bf16 %v168_v16, %v161_v15  ;;  %v175_v63 = vand.u32 4294901760, %v2549_v61  ;;  %v182_v48 = vand.u32 4294901760, %v181_v17 }
  0x3e   :  { %v189_v59 = vand.u32 4294901760, %v188_v50  ;;  %v202_v20 = vsub.f32 %v2554_v2, %v201_v22  ;;  %v209_v33 = vsub.f32 %v2557_v3, %v208_v23  ;;  %v230_v17 = vsub.f32 %v2563_v6, %v229_v27 }
  0x3f   :  { %v196_v21 = vand.u32 4294901760, %v195_v60  ;;  %v2029_v9 = vpack.c.bf16 %v182_v48, %v175_v63  ;;  %v216_v48 = vsub.f32 %v2559_v4, %v215_v25  ;;  %v223_v63 = vsub.f32 %v2561_v5, %v222_v26 }
  0x40   :  { %2018 = vmatpush3.bf16.msra.mxu0 %v2527_v53  ;;  %2162 = vmatpush3.bf16.msra.mxu1 %v2527_v53  ;;  %v203_v15 = vand.u32 4294901760, %v202_v20  ;;  %v210_v16 = vand.u32 4294901760, %v209_v33  ;;  %v244_v25 = vsub.f32 %v2567_v8, %v243_v30  ;;  %v231_v33 = vand.u32 4294901760, %v230_v17 }
  0x41   :  { %2019 = vmatprep.subr.bf16.mxu0 %v2395_v0  ;;  %2163 = vmatprep.subr.bf16.mxu1 %v2395_v0  ;;  %v2032_v61 = vpack.c.bf16 %v196_v21, %v189_v59  ;;  %v217_v23 = vand.u32 4294901760, %v216_v48  ;;  %v251_v27 = vsub.f32 %v2572_v10, %v250_v31  ;;  %v258_v30 = vsub.f32 %v2574_v11, %v257_v32 }
  0x42   :  { %v2035_v22 = vpack.c.bf16 %v210_v16, %v203_v15  ;;  %v245_v60 = vand.u32 4294901760, %v244_v25  ;;  %v2841_v59 = vand.u32 4294901760, %v2576_v14  ;;  %v2053_v15 = vpack.c.bf16 %v2522_v51, %v2508_v38 }
  0x43   :  { %v2062_v38 = vpack.c.bf16 %v2561_v5, %v2559_v4  ;;  %v2065_v51 = vpack.c.bf16 %v2565_v7, %v2563_v6 }
  0x44   :  { %2021 = vmatpush3.bf16.msra.mxu0 %v2529_v54  ;;  %2165 = vmatpush3.bf16.msra.mxu1 %v2529_v54  ;;  %v265_v21 = vsub.f32 %v2576_v14, %v2841_v59 }
  0x45   :  { %2022 = vmatprep.subr.bf16.mxu0 %v2395_v0  ;;  %2166 = vmatprep.subr.bf16.mxu1 %v2395_v0 }
  0x46   :  { %v266_v20 = vand.u32 4294901760, %v265_v21 }
  0x48   :  { %2024 = vmatpush3.bf16.msra.mxu0 %v2531_v55  ;;  %2168 = vmatpush3.bf16.msra.mxu1 %v2531_v55 }
  0x49   :  { %2025 = vmatprep.subr.bf16.mxu0 %v2395_v0  ;;  %2169 = vmatprep.subr.bf16.mxu1 %v2395_v0 }
  0x4b   :  { %1614 = vmatmul.mubr.f32.vlgmr.msra.gmra.mrb[0].mxu0 %v150_v49  ;;  %1824 = vmatmul.mubr.f32.vlgmr.msra.gmra.mrb[0].mxu1 %v793_v56  ;;  %v224_v49 = vand.u32 4294901760, %v223_v63  ;;  %v237_v56 = vsub.f32 %v2565_v7, %v236_v28 }
  0x4c   :  { %2027 = vmatpush3.bf16.msra.mxu0 %v2026_v62  ;;  %2171 = vmatpush3.bf16.msra.mxu1 %v2026_v62  ;;  %v252_v62 = vand.u32 4294901760, %v251_v27 }
  0x4d   :  { %2028 = vmatprep.subr.bf16.mxu0 %v2395_v0  ;;  %2172 = vmatprep.subr.bf16.mxu1 %v2395_v0  ;;  %v2038_v26 = vpack.c.bf16 %v224_v49, %v217_v23  ;;  %v238_v50 = vand.u32 4294901760, %v237_v56 }
  0x4e   :  { %1648 = vmatprep.mubr.msk.f32.mxu0 %vm2396_vm0, %v2397_v1  ;;  %1858 = vmatprep.mubr.msk.f32.mxu1 %vm2396_vm0, %v2397_v1  ;;  %v2044_v31 = vpack.c.bf16 %v252_v62, %v245_v60 }
  0x4f   :  { %v2041_v28 = vpack.c.bf16 %v238_v50, %v231_v33 }
  0x50   :  { %2030 = vmatpush3.bf16.msra.mxu0 %v2029_v9  ;;  %2174 = vmatpush3.bf16.msra.mxu1 %v2029_v9  ;;  %v259_v9 = vand.u32 4294901760, %v258_v30 }
  0x51   :  { %2031 = vmatprep.subr.bf16.mxu0 %v2395_v0  ;;  %2175 = vmatprep.subr.bf16.mxu1 %v2395_v0 }
  0x52   :  { %v2047_v32 = vpack.c.bf16 %v266_v20, %v259_v9 }
  0x54   :  { %2033 = vmatpush3.bf16.msra.mxu0 %v2032_v61  ;;  %2177 = vmatpush3.bf16.msra.mxu1 %v2032_v61  ;;  %v2050_v61 = vpack.c.bf16 %v2506_v37, %v2498_v35  ;;  %v2056_v35 = vpack.c.bf16 %v2540_v58, %v2537_v57  ;;  %v2059_v37 = vpack.c.bf16 %v2557_v3, %v2554_v2  ;;  %v2842_v2 = vand.u32 4294901760, %v2504_v36 }
  0x55   :  { %2034 = vmatprep.subr.bf16.mxu0 %v2395_v0  ;;  %2178 = vmatprep.subr.bf16.mxu1 %v2395_v0  ;;  %v2068_v57 = vpack.c.bf16 %v2572_v10, %v2567_v8  ;;  %v2071_v58 = vpack.c.bf16 %v2576_v14, %v2574_v11  ;;  %v2843_v3 = vand.u32 4294901760, %v2525_v52 }
  0x58   :  { %2036 = vmatpush3.bf16.msra.mxu0 %v2035_v22  ;;  %2180 = vmatpush3.bf16.msra.mxu1 %v2035_v22 }
  0x59   :  { %2037 = vmatprep.subr.bf16.mxu0 %v2395_v0  ;;  %2181 = vmatprep.subr.bf16.mxu1 %v2395_v0 }
  0x5c   :  { %2039 = vmatpush3.bf16.msra.mxu0 %v2038_v26  ;;  %2183 = vmatpush3.bf16.msra.mxu1 %v2038_v26 }
  0x5d   :  { %2040 = vmatprep.subr.bf16.mxu0 %v2395_v0  ;;  %2184 = vmatprep.subr.bf16.mxu1 %v2395_v0 }
  0x60   :  { %2042 = vmatpush3.bf16.msra.mxu0 %v2041_v28  ;;  %2186 = vmatpush3.bf16.msra.mxu1 %v2041_v28 }
  0x61   :  { %2043 = vmatprep.subr.bf16.mxu0 %v2395_v0  ;;  %2187 = vmatprep.subr.bf16.mxu1 %v2395_v0 }
  0x64   :  { %2045 = vmatpush3.bf16.msra.mxu0 %v2044_v31  ;;  %2189 = vmatpush3.bf16.msra.mxu1 %v2044_v31 }
  0x65   :  { %2046 = vmatprep.subr.bf16.mxu0 %v2395_v0  ;;  %2190 = vmatprep.subr.bf16.mxu1 %v2395_v0 }
  0x68   :  { %2048 = vmatpush3.bf16.msra.mxu0 %v2047_v32  ;;  %2192 = vmatpush3.bf16.msra.mxu1 %v2047_v32 }
  0x69   :  { %2049 = vmatprep.subr.bf16.mxu0 %v2395_v0  ;;  %2193 = vmatprep.subr.bf16.mxu1 %v2395_v0 }
  0x6b   :  { %1649 = vmatmul.mubr.f32.vlgmr.msra.gmra.mrb[0].mxu0 %v2490_v24  ;;  %1859 = vmatmul.mubr.f32.vlgmr.msra.gmra.mrb[0].mxu1 %v2510_v41 }
  0x6c   :  { %2051 = vmatpush3.bf16.msra.mxu0 %v2050_v61  ;;  %2195 = vmatpush3.bf16.msra.mxu1 %v2050_v61 }
  0x6d   :  { %2052 = vmatprep.subr.bf16.mxu0 %v2395_v0  ;;  %2196 = vmatprep.subr.bf16.mxu1 %v2395_v0 }
  0x6e   :  { %1683 = vmatprep.mubr.msk.f32.mxu0 %vm2396_vm0, %v2397_v1  ;;  %1893 = vmatprep.mubr.msk.f32.mxu1 %vm2396_vm0, %v2397_v1 }
  0x70   :  { %2054 = vmatpush3.bf16.msra.mxu0 %v2053_v15  ;;  %2198 = vmatpush3.bf16.msra.mxu1 %v2053_v15 }
  0x71   :  { %2055 = vmatprep.subr.bf16.mxu0 %v2395_v0  ;;  %2199 = vmatprep.subr.bf16.mxu1 %v2395_v0 }
  0x74   :  { %2057 = vmatpush3.bf16.msra.mxu0 %v2056_v35  ;;  %2201 = vmatpush3.bf16.msra.mxu1 %v2056_v35 }
  0x75   :  { %2058 = vmatprep.subr.bf16.mxu0 %v2395_v0  ;;  %2202 = vmatprep.subr.bf16.mxu1 %v2395_v0 }
  0x78   :  { %2060 = vmatpush3.bf16.msra.mxu0 %v2059_v37  ;;  %2204 = vmatpush3.bf16.msra.mxu1 %v2059_v37 }
  0x79   :  { %2061 = vmatprep.subr.bf16.mxu0 %v2395_v0  ;;  %2205 = vmatprep.subr.bf16.mxu1 %v2395_v0 }
  0x7c   :  { %2063 = vmatpush3.bf16.msra.mxu0 %v2062_v38  ;;  %2207 = vmatpush3.bf16.msra.mxu1 %v2062_v38 }
  0x7d   :  { %2064 = vmatprep.subr.bf16.mxu0 %v2395_v0  ;;  %2208 = vmatprep.subr.bf16.mxu1 %v2395_v0 }
  0x80   :  { %2066 = vmatpush3.bf16.msra.mxu0 %v2065_v51  ;;  %2210 = vmatpush3.bf16.msra.mxu1 %v2065_v51 }
  0x81   :  { %2067 = vmatprep.subr.bf16.mxu0 %v2395_v0  ;;  %2211 = vmatprep.subr.bf16.mxu1 %v2395_v0 }
  0x84   :  { %2069 = vmatpush3.bf16.msra.mxu0 %v2068_v57  ;;  %2213 = vmatpush3.bf16.msra.mxu1 %v2068_v57 }
  0x85   :  { %2070 = vmatprep.subr.bf16.mxu0 %v2395_v0  ;;  %2214 = vmatprep.subr.bf16.mxu1 %v2395_v0 }
  0x88   :  { %2072 = vmatpush3.bf16.msra.mxu0 %v2071_v58  ;;  %2216 = vmatpush3.bf16.msra.mxu1 %v2071_v58 }
  0x89   :  { %2073 = vmatprep.subr.bf16.mxu0 %v2395_v0  ;;  %2217 = vmatprep.subr.bf16.mxu1 %v2395_v0 }
  0x8b   :  { %1684 = vmatmul.mubr.f32.vlgmr.msra.gmra.mrb[0].mxu0 %v2504_v36  ;;  %1894 = vmatmul.mubr.f32.vlgmr.msra.gmra.mrb[0].mxu1 %v2525_v52 }
  0x8c   :  { %2075 = vmatpush3.bf16.msra.mxu0 %v2465_v12  ;;  %2219 = vmatpush3.bf16.msra.mxu1 %v2465_v12 }
  0x8d   :  { %2076 = vmatprep.subr.bf16.mxu0 %v2395_v0  ;;  %2220 = vmatprep.subr.bf16.mxu1 %v2395_v0 }
  0x8e   :  { %1718 = vmatprep.mubr.msk.f32.mxu0 %vm2396_vm0, %v2397_v1  ;;  %1928 = vmatprep.mubr.msk.f32.mxu1 %vm2396_vm0, %v2397_v1 }
  0x90   :  { %2078 = vmatpush3.bf16.msra.mxu0 %v2469_v13  ;;  %2222 = vmatpush3.bf16.msra.mxu1 %v2469_v13 }
  0x91   :  { %2079 = vmatprep.subr.bf16.mxu0 %v2395_v0  ;;  %2223 = vmatprep.subr.bf16.mxu1 %v2395_v0 }
  0x94   :  { %2081 = vmatpush3.bf16.msra.mxu0 %v2483_v19  ;;  %2225 = vmatpush3.bf16.msra.mxu1 %v2483_v19 }
  0x95   :  { %2082 = vmatprep.subr.bf16.mxu0 %v2395_v0  ;;  %2226 = vmatprep.subr.bf16.mxu1 %v2395_v0 }
  0x98   :  { %2084 = vmatpush3.bf16.msra.mxu0 %v2496_v29  ;;  %2228 = vmatpush3.bf16.msra.mxu1 %v2496_v29 }
  0x99   :  { %2085 = vmatprep.subr.bf16.mxu0 %v2395_v0  ;;  %2229 = vmatprep.subr.bf16.mxu1 %v2395_v0 }
  0x9c   :  { %2087 = vmatpush3.bf16.msra.mxu0 %v2514_v46  ;;  %2231 = vmatpush3.bf16.msra.mxu1 %v2514_v46 }
  0x9d   :  { %2088 = vmatprep.subr.bf16.mxu0 %v2395_v0  ;;  %2232 = vmatprep.subr.bf16.mxu1 %v2395_v0 }
  0xa0   :  { %2090 = vmatpush3.bf16.msra.mxu0 %v2527_v53  ;;  %2234 = vmatpush3.bf16.msra.mxu1 %v2527_v53 }
  0xa1   :  { %2091 = vmatprep.subr.bf16.mxu0 %v2395_v0  ;;  %2235 = vmatprep.subr.bf16.mxu1 %v2395_v0 }
  0xa4   :  { %2093 = vmatpush3.bf16.msra.mxu0 %v2529_v54  ;;  %2237 = vmatpush3.bf16.msra.mxu1 %v2529_v54 }
  0xa5   :  { %2094 = vmatprep.subr.bf16.mxu0 %v2395_v0  ;;  %2238 = vmatprep.subr.bf16.mxu1 %v2395_v0 }
  0xa8   :  { %2096 = vmatpush3.bf16.msra.mxu0 %v2531_v55  ;;  %2240 = vmatpush3.bf16.msra.mxu1 %v2531_v55 }
  0xa9   :  { %2097 = vmatprep.subr.bf16.mxu0 %v2395_v0  ;;  %2241 = vmatprep.subr.bf16.mxu1 %v2395_v0 }
  0xab   :  { %1719 = vmatmul.mubr.f32.vlgmr.msra.gmra.mrb[0].mxu0 %v2842_v2  ;;  %1929 = vmatmul.mubr.f32.vlgmr.msra.gmra.mrb[0].mxu1 %v2843_v3 }
  0xac   :  { %2099 = vmatpush3.bf16.msra.mxu0 %v2597_v34  ;;  %2243 = vmatpush3.bf16.msra.mxu1 %v2597_v34 }
  0xad   :  { %2100 = vmatprep.subr.bf16.mxu0 %v2395_v0  ;;  %2244 = vmatprep.subr.bf16.mxu1 %v2395_v0 }
  0xae   :  { %1753 = vmatprep.mubr.msk.f32.mxu0 %vm2396_vm0, %v2397_v1  ;;  %1963 = vmatprep.mubr.msk.f32.mxu1 %vm2396_vm0, %v2397_v1 }
  0xb0   :  { %2102 = vmatpush3.bf16.msra.mxu0 %v2601_v39  ;;  %2246 = vmatpush3.bf16.msra.mxu1 %v2601_v39 }
  0xb1   :  { %2103 = vmatprep.subr.bf16.mxu0 %v2395_v0  ;;  %2247 = vmatprep.subr.bf16.mxu1 %v2395_v0 }
  0xb4   :  { %2105 = vmatpush3.bf16.msra.mxu0 %v2603_v40  ;;  %2249 = vmatpush3.bf16.msra.mxu1 %v2603_v40 }
  0xb5   :  { %2106 = vmatprep.subr.bf16.mxu0 %v2395_v0  ;;  %2250 = vmatprep.subr.bf16.mxu1 %v2395_v0 }
  0xb8   :  { %2108 = vmatpush3.bf16.msra.mxu0 %v2605_v42  ;;  %2252 = vmatpush3.bf16.msra.mxu1 %v2605_v42 }
  0xb9   :  { %2109 = vmatprep.subr.bf16.mxu0 %v2395_v0  ;;  %2253 = vmatprep.subr.bf16.mxu1 %v2395_v0 }
  0xbc   :  { %2111 = vmatpush3.bf16.msra.mxu0 %v2607_v43  ;;  %2255 = vmatpush3.bf16.msra.mxu1 %v2607_v43 }
  0xbd   :  { %2112 = vmatprep.subr.bf16.mxu0 %v2395_v0  ;;  %2256 = vmatprep.subr.bf16.mxu1 %v2395_v0 }
  0xc0   :  { %2114 = vmatpush3.bf16.msra.mxu0 %v2609_v44  ;;  %2258 = vmatpush3.bf16.msra.mxu1 %v2609_v44 }
  0xc1   :  { %2115 = vmatprep.subr.bf16.mxu0 %v2395_v0  ;;  %2259 = vmatprep.subr.bf16.mxu1 %v2395_v0 }
  0xc4   :  { %2117 = vmatpush3.bf16.msra.mxu0 %v2611_v45  ;;  %2261 = vmatpush3.bf16.msra.mxu1 %v2611_v45 }
  0xc5   :  { %2118 = vmatprep.subr.bf16.mxu0 %v2395_v0  ;;  %2262 = vmatprep.subr.bf16.mxu1 %v2395_v0 }
  0xc8   :  { %2120 = vmatpush3.bf16.msra.mxu0 %v2617_v47  ;;  %2264 = vmatpush3.bf16.msra.mxu1 %v2617_v47 }
  0xc9   :  { %2121 = vmatprep.subr.bf16.mxu0 %v2395_v0  ;;  %2265 = vmatprep.subr.bf16.mxu1 %v2395_v0 }
  0xcb   :  { %1754 = vmatmul.mubr.f32.vlgmr.msra.gmra.mrb[0].mxu0 %v2490_v24  ;;  %1964 = vmatmul.mubr.f32.vlgmr.msra.gmra.mrb[0].mxu1 %v2510_v41 }
  0xcc   :  { %2123 = vmatpush3.bf16.msra.mxu0 %v2465_v12  ;;  %2267 = vmatpush3.bf16.msra.mxu1 %v2465_v12 }
  0xcd   :  { %2124 = vmatprep.subr.bf16.mxu0 %v2395_v0  ;;  %2268 = vmatprep.subr.bf16.mxu1 %v2395_v0 }
  0xce   :  { %1788 = vmatprep.mubr.msk.f32.mxu0 %vm2396_vm0, %v2397_v1  ;;  %1998 = vmatprep.mubr.msk.f32.mxu1 %vm2396_vm0, %v2397_v1 }
  0xd0   :  { %2126 = vmatpush3.bf16.msra.mxu0 %v2469_v13  ;;  %2270 = vmatpush3.bf16.msra.mxu1 %v2469_v13 }
  0xd1   :  { %2127 = vmatprep.subr.bf16.mxu0 %v2395_v0  ;;  %2271 = vmatprep.subr.bf16.mxu1 %v2395_v0 }
  0xd4   :  { %2129 = vmatpush3.bf16.msra.mxu0 %v2483_v19  ;;  %2273 = vmatpush3.bf16.msra.mxu1 %v2483_v19 }
  0xd5   :  { %2130 = vmatprep.subr.bf16.mxu0 %v2395_v0  ;;  %2274 = vmatprep.subr.bf16.mxu1 %v2395_v0 }
  0xd8   :  { %2132 = vmatpush3.bf16.msra.mxu0 %v2496_v29  ;;  %2276 = vmatpush3.bf16.msra.mxu1 %v2496_v29 }
  0xd9   :  { %2133 = vmatprep.subr.bf16.mxu0 %v2395_v0  ;;  %2277 = vmatprep.subr.bf16.mxu1 %v2395_v0 }
  0xdc   :  { %2135 = vmatpush3.bf16.msra.mxu0 %v2514_v46  ;;  %2279 = vmatpush3.bf16.msra.mxu1 %v2514_v46 }
  0xdd   :  { %2136 = vmatprep.subr.bf16.mxu0 %v2395_v0  ;;  %2280 = vmatprep.subr.bf16.mxu1 %v2395_v0 }
  0xe0   :  { %2138 = vmatpush3.bf16.msra.mxu0 %v2527_v53  ;;  %2282 = vmatpush3.bf16.msra.mxu1 %v2527_v53 }
  0xe1   :  { %2139 = vmatprep.subr.bf16.mxu0 %v2395_v0  ;;  %2283 = vmatprep.subr.bf16.mxu1 %v2395_v0 }
  0xe4   :  { %2141 = vmatpush3.bf16.msra.mxu0 %v2529_v54  ;;  %2285 = vmatpush3.bf16.msra.mxu1 %v2529_v54 }
  0xe5   :  { %2142 = vmatprep.subr.bf16.mxu0 %v2395_v0  ;;  %2286 = vmatprep.subr.bf16.mxu1 %v2395_v0  ;;  %v1354_v0 = vstv %s2833_s0 }
  0xe8   :  { %2144 = vmatpush3.bf16.msra.mxu0 %v2531_v55  ;;  %2288 = vmatpush3.bf16.msra.mxu1 %v2531_v55 }
  0xeb   :  { %1789 = vmatmul.mubr.f32.vlgmr.msra.gmra.mrb[0].mxu0 %v2490_v24  ;;  %1999 = vmatmul.mubr.f32.vlgmr.msra.gmra.mrb[0].mxu1 %v2510_v41  ;;  %v1358_v41 = vstv %s2834_s1 }
 0x1be   :  { %v702_v1 = vpop.f32.mrb[0].mxu0  ;;  %v1345_v12 = vpop.f32.mrb[0].mxu1 }
 0x1bf   :  { %v706_v13 = vmul.f32 0.03125, %v702_v1  ;;  %v1790_v19 = vpop.f32.mrb[1].mxu0  ;;  %v2000_v29 = vpop.f32.mrb[1].mxu1  ;;  %v1349_v46 = vmul.f32 0.03125, %v1345_v12 }
 0x1c1   :  { %v1350_v36 = vmul.f32 %v706_v13, %v706_v13  ;;  %v1356_v55 = vsub.f32 %v2479_v18, %v706_v13 }
 0x1c3   :  { %v1351_v52 = vsub.f32 %v1349_v46, %v1350_v36 }
 0x1c5   :  { %v1352_v53 = vadd.f32 1e-06, %v1351_v52 }
 0x1c7   :  { %2317 = vrsqrt.f32 %v1352_v53 }
 0x1d1   :  { %v2318_v54 = vpop.eup %2317 }
 0x1d2   :  { %v1355_v24 = vmul.f32 %v2318_v54, %v1354_v0 }
 0x1d4   :  { %v1357_v4 = vmul.f32 %v1356_v55, %v1355_v24 }
 0x1d6   :  { %v1359_v5 = vadd.f32 %v1358_v41, %v1357_v4 }
 0x1d8   :  { %1360 = vst [vmem:[#allocation9] sm:$0xff] %v1359_v5 }
 0x1d9   :  { %2374 = shalt.err (!%p2371_p6)
}
 0x1da   :  { %s2375_s21 = scalar_lea.hbm %s2837_s4, 128 }
 0x1db   :  { %p2376_p7 = scmp.ne.s32.totalorder %s2837_s4, %s2375_s21  ;;  %p2379_p8 = scmp.lt.u32.totalorder %s2375_s21, %s2837_s4 }
 0x1dd   :  { %p2381_p9 = pnand %p2379_p8, %p2376_p7 }
 0x1df   :  { %2384 = shalt.err (!%p2381_p9)
}
 0x1e0   :  { %1370 = dma.vmem_to_hbm [thread:$0]  %s1368_s18, 128, %s2837_s4, [#allocation6]  }
 0x1e1   :  { %2389 = dma.done.wait [#allocation6], 128  }
 0x1e2   :  { %2390 = vsyncadd [#allocation6], 4294967168 }
 0x1e3   :  { %1374 = vsyncpa [#allocation5], 1 }
 0x1e4   :  { %1375 = vsyncpa [#allocation8], 1 }
 0x1e5   :  { %1376 = vsyncpa [#allocation6], 1 }

</bundles_post_ra>
